<compile_context>
chip_gen: v5e
topology: v5e:2x2
jax: 0.10.0
libtpu: 0.0.40
codegen_flags: <defaults>
</compile_context>

<pallas_src>
import functools

import jax
import jax.numpy as jnp
from jax.experimental import pallas as pl
from jax.experimental.pallas import tpu as pltpu


def _round_up(n, m):
    return (n + m - 1) // m * m


def _spatial_tile_elems(c, itemsize=4):
    """Generation-aware spatial tile length in elements (multiple of 128 lanes)."""
    target_bytes = 4 << 20                     # v6e-class default: ~4 MiB per tile
    try:
        kind = jax.devices()[0].device_kind.lower()
        if ("v5 lite" in kind) or ("v5e" in kind) or ("v5lite" in kind):
            target_bytes = 1 << 20             # v5e: ~0.8 TB/s HBM, small scoped VMEM
        elif "v7" in kind:
            target_bytes = 8 << 20             # v7x: 3.2 TB/s HBM but only 64 MiB VMEM
    except Exception:
        pass
    lanes = (target_bytes // (c * itemsize)) // 128 * 128
    return max(128, lanes)


def _random_do_kernel(x_hbm, mask_ref, w_ref, b_ref, o_hbm, buf, sem, *, thw, C):
    """One grid step == (one batch sample) x (one spatial tile).

    x_hbm   : HBM (B, C, HW_pad) f32  -- raw input ref (no auto-DMA)
    mask_ref: SMEM (B,) int32         -- per-sample do/don't flags
    w_ref   : VMEM (C, C) f32         -- 1x1-conv weight
    b_ref   : VMEM (C, 1) f32         -- bias
    o_hbm   : HBM (B, C, HW_pad) f32  -- output ref, aliases x_hbm
    buf     : VMEM (C, thw) f32       -- scratch tile
    sem     : DMA semaphore
    """
    i = pl.program_id(0)               # batch-sample index
    j = pl.program_id(1)               # spatial-tile index
    do = mask_ref[i] > 0

    @pl.when(do)
    def _apply_thing():
        col = pl.multiple_of(j * thw, 128)

        # Gated read: only selected samples are pulled from HBM.
        cp_in = pltpu.make_async_copy(x_hbm.at[i, :, pl.ds(col, thw)], buf, sem)
        cp_in.start()
        cp_in.wait()

        # thing(x): y = relu(W @ x + b), computed as C full-(C, thw)-tile FMAs
        # via (C,1) x (1,thw) broadcasting (C is tiny; MXU would be >97% padding).
        x = buf[...]                   # (C, thw)
        w = w_ref[...]                 # (C, C)
        y = w[:, 0:1] * x[0:1, :]
        for c in range(1, C):
            y = y + w[:, c:c + 1] * x[c:c + 1, :]
        y = jnp.maximum(y + b_ref[...], 0.0)
        buf[...] = y.astype(buf.dtype)

        # Gated write-back: unselected samples are never written (out aliases x,
        # so untouched bytes already hold the original input).
        cp_out = pltpu.make_async_copy(buf, o_hbm.at[i, :, pl.ds(col, thw)], sem)
        cp_out.start()
        cp_out.wait()


def random_do(x_nchw, mask_i32, w, b):
    """x_nchw: (B, C, H, W) f32; mask_i32: (B,) int32; w: (C, C) f32; b: (C,) f32.

    WARNING: the input buffer is aliased into the output (PyTorch in-place
    semantics); do not reuse x_nchw after calling.
    """
    B, C, H, W = x_nchw.shape
    HW = H * W

    # Lane-dense spatial tiling: tile length is a multiple of 128; HW is padded up
    # to a multiple of the tile so every DMA / store is full-lane and unmasked.
    thw = min(_round_up(HW, 128), _spatial_tile_elems(C))
    HW_pad = _round_up(HW, thw)
    n_hw = HW_pad // thw

    x = x_nchw.reshape(B, C, HW)
    if HW_pad != HW:
        x = jnp.pad(x, ((0, 0), (0, 0), (0, HW_pad - HW)))

    b2 = b.reshape(C, 1)

    buf_bytes = C * thw * 4
    vmem_limit = min(64 << 20, max(32 << 20, 2 * buf_bytes + (4 << 20)))

    kernel = functools.partial(_random_do_kernel, thw=thw, C=C)

    out = pl.pallas_call(
        kernel,
        out_shape=jax.ShapeDtypeStruct((B, C, HW_pad), x.dtype),
        grid=(B, n_hw),
        in_specs=[
            pl.BlockSpec(memory_space=pl.ANY),                   # x: raw HBM ref
            pl.BlockSpec(memory_space=pltpu.MemorySpace.SMEM),   # mask (B,)
            pl.BlockSpec((C, C), lambda i, j: (0, 0)),           # w (VMEM, fetched once)
            pl.BlockSpec((C, 1), lambda i, j: (0, 0)),           # b (VMEM, fetched once)
        ],
        out_specs=pl.BlockSpec(memory_space=pl.ANY),             # out: raw HBM ref
        scratch_shapes=[
            pltpu.VMEM((C, thw), jnp.float32),                   # tile scratch
            pltpu.SemaphoreType.DMA,                             # DMA completion sem
        ],
        # PyTorch's x[mask] = thing(x[mask]) is in-place: alias x -> out so samples
        # the kernel never touches keep their original bytes (and no 2nd HBM buffer).
        input_output_aliases={0: 0},
        compiler_params=pltpu.CompilerParams(
            dimension_semantics=("parallel", "parallel"),
            vmem_limit_bytes=vmem_limit,
        ),
    )(x, mask_i32, w, b2)

    if HW_pad != HW:
        out = out[:, :, :HW]
    return out.reshape(B, C, H, W)


def _reference(x_nchw, mask_i32, w, b):
    """Plain-JAX reference of the same semantics (sanity check)."""
    B, C, H, W = x_nchw.shape
    x = x_nchw.reshape(B, C, H * W)
    y = jnp.einsum("oc,bcs->bos", w, x) + b.reshape(1, C, 1)
    y = jnp.maximum(y, 0.0)
    sel = (mask_i32 > 0).reshape(B, 1, 1)
    return jnp.where(sel, y, x).reshape(B, C, H, W)


if __name__ == "__main__":
    B, C, H, W = 2, 4, 16, 16
    prob_do = 0.5

    key = jax.random.PRNGKey(0)
    kx, km, kw, kb = jax.random.split(key, 4)

    x = jax.random.normal(kx, (B, C, H, W), dtype=jnp.float32)

    # torch.rand(batch) < prob_do  ->  uniform draw in plain JAX (glue), int32 mask
    mask = (jax.random.uniform(km, (B,)) < prob_do).astype(jnp.int32)

    # deterministic "thing" parameters (1x1 conv weight + bias)
    w = jax.random.normal(kw, (C, C), dtype=jnp.float32) * 0.5
    b = jax.random.normal(kb, (C,), dtype=jnp.float32) * 0.1

    # reference computed first (the kernel output aliases x)
    ref = _reference(x, mask, w, b)

    out = random_do(x, mask, w, b)
    out = jax.block_until_ready(out)

    assert out.shape == (B, C, H, W)
    assert jnp.allclose(out, ref, atol=1e-5, rtol=1e-5)

    print("KERNEL_OK")
</pallas_src>

<mosaic_0001>
module attributes {stable_mosaic.version = 11 : i64} {
  func.func @_random_do_kernel(%arg0: i32, %arg1: i32, %arg2: memref<2x4x256xf32, #tpu.memory_space<any>>, %arg3: memref<2xi32, #tpu.memory_space<smem>>, %arg4: memref<4x4xf32, #tpu.memory_space<vmem>>, %arg5: memref<4x1xf32, #tpu.memory_space<vmem>>, %arg6: memref<2x4x256xf32, #tpu.memory_space<any>>, %arg7: memref<4x256xf32, #tpu.memory_space<vmem>>, %arg8: memref<!tpu.dma_semaphore, #tpu.memory_space<semaphore_mem>>) attributes {dimension_semantics = [#tpu.dimension_semantics<parallel>, #tpu.dimension_semantics<parallel>], iteration_bounds = array<i64: 2, 1>, scalar_prefetch = 0 : i64, scratch_operands = 2 : i64, tpu.core_type = #tpu.core_type<tc>, window_params = [{}, {transform_indices = @transform_1, window_bounds = array<i64: 2>}, {pipeline_mode = #tpu.pipeline_mode<synchronous>, transform_indices = @transform_2, window_bounds = array<i64: 4, 4>}, {pipeline_mode = #tpu.pipeline_mode<synchronous>, transform_indices = @transform_3, window_bounds = array<i64: 4, 1>}, {}]} {
    %0 = arith.index_cast %arg0 : i32 to index
    %1 = memref.load %arg3[%0] : memref<2xi32, #tpu.memory_space<smem>>
    %c0_i32 = arith.constant 0 : i32
    %2 = arith.cmpi sgt, %1, %c0_i32 : i32
    %3 = arith.extui %2 : i1 to i32
    %c0_i32_0 = arith.constant 0 : i32
    %4 = arith.cmpi ne, %3, %c0_i32_0 : i32
    scf.if %4 {
      %c256_i32 = arith.constant 256 : i32
      %5 = arith.muli %arg1, %c256_i32 : i32
      %6 = tpu.assume_multiple %5, 128 : i32
      %c0_i32_1 = arith.constant 0 : i32
      %7 = tpu.memref_slice %arg2[%arg0, %c0_i32_1, %6] : memref<2x4x256xf32, #tpu.memory_space<any>> -> memref<1x4x256xf32, #tpu.memory_space<any>>
      %8 = tpu.memref_squeeze %7 : memref<1x4x256xf32, #tpu.memory_space<any>> -> memref<4x256xf32, #tpu.memory_space<any>>
      tpu.enqueue_dma source(%8 : memref<4x256xf32, #tpu.memory_space<any>>) target(%arg7 : memref<4x256xf32, #tpu.memory_space<vmem>>) target_semaphore(%arg8 : memref<!tpu.dma_semaphore, #tpu.memory_space<semaphore_mem>>)
      %c0_i32_2 = arith.constant 0 : i32
      %9 = tpu.memref_slice %arg2[%arg0, %c0_i32_2, %6] : memref<2x4x256xf32, #tpu.memory_space<any>> -> memref<1x4x256xf32, #tpu.memory_space<any>>
      %10 = tpu.memref_squeeze %9 : memref<1x4x256xf32, #tpu.memory_space<any>> -> memref<4x256xf32, #tpu.memory_space<any>>
      tpu.wait_dma2 semaphore(%arg8 : memref<!tpu.dma_semaphore, #tpu.memory_space<semaphore_mem>>) src(%10 : memref<4x256xf32, #tpu.memory_space<any>>) dst(%arg7 : memref<4x256xf32, #tpu.memory_space<vmem>>)
      %c0 = arith.constant 0 : index
      %c0_3 = arith.constant 0 : index
      %11 = vector.load %arg7[%c0, %c0_3] : memref<4x256xf32, #tpu.memory_space<vmem>>, vector<4x256xf32>
      %c0_4 = arith.constant 0 : index
      %c0_5 = arith.constant 0 : index
      %12 = vector.load %arg4[%c0_4, %c0_5] : memref<4x4xf32, #tpu.memory_space<vmem>>, vector<4x4xf32>
      %13 = vector.extract_strided_slice %12 {offsets = [0, 0], sizes = [4, 1], strides = [1, 1]} : vector<4x4xf32> to vector<4x1xf32>
      %14 = vector.extract_strided_slice %11 {offsets = [0, 0], sizes = [1, 256], strides = [1, 1]} : vector<4x256xf32> to vector<1x256xf32>
      %15 = vector.broadcast %13 : vector<4x1xf32> to vector<4x256xf32>
      %16 = vector.broadcast %14 : vector<1x256xf32> to vector<4x256xf32>
      %17 = arith.mulf %15, %16 : vector<4x256xf32>
      %18 = vector.extract_strided_slice %12 {offsets = [0, 1], sizes = [4, 1], strides = [1, 1]} : vector<4x4xf32> to vector<4x1xf32>
      %19 = vector.extract_strided_slice %11 {offsets = [1, 0], sizes = [1, 256], strides = [1, 1]} : vector<4x256xf32> to vector<1x256xf32>
      %20 = vector.broadcast %18 : vector<4x1xf32> to vector<4x256xf32>
      %21 = vector.broadcast %19 : vector<1x256xf32> to vector<4x256xf32>
      %22 = arith.mulf %20, %21 : vector<4x256xf32>
      %23 = arith.addf %17, %22 : vector<4x256xf32>
      %24 = vector.extract_strided_slice %12 {offsets = [0, 2], sizes = [4, 1], strides = [1, 1]} : vector<4x4xf32> to vector<4x1xf32>
      %25 = vector.extract_strided_slice %11 {offsets = [2, 0], sizes = [1, 256], strides = [1, 1]} : vector<4x256xf32> to vector<1x256xf32>
      %26 = vector.broadcast %24 : vector<4x1xf32> to vector<4x256xf32>
      %27 = vector.broadcast %25 : vector<1x256xf32> to vector<4x256xf32>
      %28 = arith.mulf %26, %27 : vector<4x256xf32>
      %29 = arith.addf %23, %28 : vector<4x256xf32>
      %30 = vector.extract_strided_slice %12 {offsets = [0, 3], sizes = [4, 1], strides = [1, 1]} : vector<4x4xf32> to vector<4x1xf32>
      %31 = vector.extract_strided_slice %11 {offsets = [3, 0], sizes = [1, 256], strides = [1, 1]} : vector<4x256xf32> to vector<1x256xf32>
      %32 = vector.broadcast %30 : vector<4x1xf32> to vector<4x256xf32>
      %33 = vector.broadcast %31 : vector<1x256xf32> to vector<4x256xf32>
      %34 = arith.mulf %32, %33 : vector<4x256xf32>
      %35 = arith.addf %29, %34 : vector<4x256xf32>
      %c0_6 = arith.constant 0 : index
      %c0_7 = arith.constant 0 : index
      %36 = vector.load %arg5[%c0_6, %c0_7] : memref<4x1xf32, #tpu.memory_space<vmem>>, vector<4x1xf32>
      %37 = vector.broadcast %36 : vector<4x1xf32> to vector<4x256xf32>
      %38 = arith.addf %35, %37 : vector<4x256xf32>
      %cst = arith.constant 0.000000e+00 : f32
      %39 = vector.broadcast %cst : f32 to vector<4x256xf32>
      %40 = arith.maximumf %38, %39 : vector<4x256xf32>
      %c0_8 = arith.constant 0 : index
      %c0_9 = arith.constant 0 : index
      %41 = vector.load %arg7[%c0_8, %c0_9] : memref<4x256xf32, #tpu.memory_space<vmem>>, vector<4x256xf32>
      tpu.vector_store %arg7[%c0_8, %c0_9], %40 {strides = array<i32>} : memref<4x256xf32, #tpu.memory_space<vmem>>, vector<4x256xf32>,
      %c0_i32_10 = arith.constant 0 : i32
      %42 = tpu.memref_slice %arg6[%arg0, %c0_i32_10, %6] : memref<2x4x256xf32, #tpu.memory_space<any>> -> memref<1x4x256xf32, #tpu.memory_space<any>>
      %43 = tpu.memref_squeeze %42 : memref<1x4x256xf32, #tpu.memory_space<any>> -> memref<4x256xf32, #tpu.memory_space<any>>
      tpu.enqueue_dma source(%arg7 : memref<4x256xf32, #tpu.memory_space<vmem>>) target(%43 : memref<4x256xf32, #tpu.memory_space<any>>) target_semaphore(%arg8 : memref<!tpu.dma_semaphore, #tpu.memory_space<semaphore_mem>>)
      %c0_i32_11 = arith.constant 0 : i32
      %44 = tpu.memref_slice %arg6[%arg0, %c0_i32_11, %6] : memref<2x4x256xf32, #tpu.memory_space<any>> -> memref<1x4x256xf32, #tpu.memory_space<any>>
      %45 = tpu.memref_squeeze %44 : memref<1x4x256xf32, #tpu.memory_space<any>> -> memref<4x256xf32, #tpu.memory_space<any>>
      tpu.wait_dma2 semaphore(%arg8 : memref<!tpu.dma_semaphore, #tpu.memory_space<semaphore_mem>>) src(%arg7 : memref<4x256xf32, #tpu.memory_space<vmem>>) dst(%45 : memref<4x256xf32, #tpu.memory_space<any>>)
    } else {
    }
    return
  }
  func.func @transform_1(%arg0: i32, %arg1: i32) -> i32 {
    %c0_i32 = arith.constant 0 : i32
    %c0_i32_0 = arith.constant 0 : i32
    return %c0_i32 : i32
  }
  func.func @transform_2(%arg0: i32, %arg1: i32) -> (i32, i32) {
    %c0_i32 = arith.constant 0 : i32
    %c0_i32_0 = arith.constant 0 : i32
    %c0_i32_1 = arith.constant 0 : i32
    return %c0_i32, %c0_i32_0 : i32, i32
  }
  func.func @transform_3(%arg0: i32, %arg1: i32) -> (i32, i32) {
    %c0_i32 = arith.constant 0 : i32
    %c0_i32_0 = arith.constant 0 : i32
    %c0_i32_1 = arith.constant 0 : i32
    return %c0_i32, %c0_i32_0 : i32, i32
  }
}

</mosaic_0001>

<bundles_post_ra>
// kernel: tpu_custom_call.1
= control target key start
LH: loop header
LB: loop body
LE: loop exit
PB: predicated region body
PF: predicated region fallthrough
CT: control target
= control target key end

     0   :  { %9 = vsyncpa [#allocation5], 0  ;;  %s460_s15 = smov 0   ;;  %s462_s16 = smov 0   ;;  %s530_s0 = inlined_call_operand.hbm [shape: f32[2,4,256], index: 0, kind: input, shape index: {}, may-alias: {0,4}]   ;;  %s531_s1 = inlined_call_operand.vmem [shape: s32[2], index: 1, kind: input, shape index: {}]   ;;  %s532_s2 = inlined_call_operand.vmem [shape: f32[4,4], index: 2, kind: input, shape index: {}]   ;;  %s533_s3 = inlined_call_operand.vmem [shape: f32[4,1], index: 3, kind: input, shape index: {}]   ;;  %s534_s4 = inlined_call_operand.hbm [shape: f32[2,4,256], index: 4, kind: output, shape index: {}, may-alias: {0,4}]  }
   0x1   :  { %s464_s17 = smov 0  }
   0x2 LB: > { %s273_s18 = sadd.s32 4294967295, %s427_s17   ;;  %s24_s19 = sadd.s32 1, %s423_s16  ;;  %s427_s17 = sphi %s464_s17, %s15_s17   ;;  %s423_s16 = sphi %s462_s16, %s536_s16   ;;  %s419_s15 = sphi %s460_s15, %s535_s15  }
   0x3   : > { %p26_p0 = scmp.ge.s32.totalorder %s24_s19, 2  ;;  %p275_p1 = scmp.lt.s32.totalorder %s427_s17, 1 }
   0x4   : > { %p295_p2 = scmp.ge.s32.totalorder %s427_s17, 1  ;;  %p296_p3 = scmp.eq.s32.totalorder %s273_s18, 0 }
   0x5   : > { %s538_s19 = smov (%p26_p0, %s24_s19), 0  ;;  %s81_s22 = sshll.u32 %s531_s1, 4  ;;  %s82_s22 = int_to_ptr.vmem [resolvable:$true] %s81_s22 }
   0x6   : > { %p292_p4 = pnand %p296_p3, %p295_p2  ;;  %s429_s23 = smov [#allocation4]  }
   0x7   : > { %98 = sbr.rel (%p275_p1) target bundleno = 182 (0xb6), region = 32 }
   0x8   : > { %294 = dma.vmem_to_smem (!%p292_p4), %s82_s22, 16, %s429_s23, [#allocation5]  }
   0xc   : > { %410 = dma.done.wait (%p296_p3), [#allocation5], 16  }
   0xd   : > { %412 = vsyncadd (%p296_p3), [#allocation5], 4294967280 }
   0xe   : > { %105 = sfence }
   0xf   : > { %s112_s24 = sld [smem:[#allocation4 + %s419_s15]] }
  0x15   : > { %p280_p5 = scmp.le.s32.totalorder %s112_s24, 0 }
  0x16   : > { %s285_s25 = sshll.u32 (!%p280_p5), %s419_s15, 3  ;;  %s430_s29 = smov (!%p280_p5), [#allocation2]  }
  0x17   : > { %116 = sbr.rel (%p280_p5) target bundleno = 182 (0xb6), region = 40  ;;  %s123_s28 = scalar_lea.hbm (!%p280_p5), %s530_s0, %s285_s25 }
  0x18   : > { %s491_s30 = sshll.u32 (!%p280_p5), %s430_s29, 4  ;;  %s131_s5 = sshll.u32 (!%p280_p5), %s123_s28, 4  ;;  %s134_s30 = int_to_ptr.vmem [resolvable:$true] %s491_s30  ;;  %s132_s5 = int_to_ptr.hbm [resolvable:$true] %s131_s5 }
  0x19   : > { %s349_s6 = sshra.s32 (!%p280_p5), %s132_s5, 4  ;;  %s353_s10 = scalar_lea.hbm (!%p280_p5), %s530_s0, 16  ;;  %s350_s6 = int_to_ptr.hbm [resolvable:$true] %s349_s6 }
  0x1a   : > { %s351_s7 = scalar_lea.hbm (!%p280_p5), %s350_s6, 8  ;;  %p354_p7 = scmp.lt.s32.totalorder (!%p280_p5), %s350_s6, %s530_s0 }
  0x1b   : > { %p352_p6 = scmp.ne.s32.totalorder (!%p280_p5), %s350_s6, %s351_s7  ;;  %p355_p8 = scmp.lt.s32.totalorder (!%p280_p5), %s353_s10, %s351_s7 }
  0x1d   : > { %p356_p9 = por %p355_p8, %p354_p7 }
  0x1f   : > { %p357_p10 = pnand %p356_p9, %p352_p6 }
  0x21   : > { %360 = shalt.err (!%p357_p10)  }
  0x22   : > { %136 = dma.hbm_to_vmem [thread:$0]  %s132_s5, 128, %s134_s30, [#allocation3] }
  0x23   : > { %413 = dma.done.wait [#allocation3], 128 }
  0x24   : > { %414 = vsyncadd [#allocation3], 4294967168  ;;  %v431_v0 = vmov 0   ;;  %v432_v1 = vmov 2   ;;  %v142_v2 = vld [vmem:[%s532_s2] sm:$0xf]  ;;  %s217_s23 = scalar_lea.hbm %s534_s4, %s285_s25 }
  0x25   : > { %328 = vset.pattern.permute.xlu0 %v431_v0  ;;  %330 = vset.pattern.permute.xlu1 %v432_v1  ;;  %v199_v3 = vld [vmem:[%s533_s3] sm:$0xf]  ;;  %v433_v4 = vmov 1   ;;  %v434_v5 = vmov 3   ;;  %s227_s24 = sshll.u32 %s217_s23, 4  ;;  %vm212_vm0 = vcmask 1043456   ;;  %s228_s24 = int_to_ptr.hbm [resolvable:$true] %s227_s24 }
  0x26   : > { %332 = vset.pattern.permute.xlu2 %v431_v0  ;;  %145 = vperm.xlu0 %328, %v142_v2   ;;  %v141_v6 = vld [vmem:[#allocation2] sm:$0xff]  ;;  %s385_s26 = sshra.s32 %s228_s24, 4  ;;  %s389_s29 = scalar_lea.hbm %s534_s4, 16  ;;  %s386_s26 = int_to_ptr.hbm [resolvable:$true] %s385_s26 }
  0x27   : > { %172 = vperm.xlu1 %330, %v142_v2   ;;  %202 = vperm.xlu2 %332, %v199_v3   ;;  %v149_v9 = vperm.slane %v141_v6, 0  ;;  %v150_v10 = vperm.slane %v141_v6, 4  ;;  %v161_v11 = vperm.slane %v141_v6, 1  ;;  %v162_v12 = vperm.slane %v141_v6, 5  ;;  %s387_s27 = scalar_lea.hbm %s386_s26, 8  ;;  %p390_p12 = scmp.lt.s32.totalorder %s386_s26, %s534_s4 }
  0x28   : > { %v175_v13 = vperm.slane %v141_v6, 2  ;;  %v176_v14 = vperm.slane %v141_v6, 6  ;;  %v189_v15 = vperm.slane %v141_v6, 3  ;;  %v190_v16 = vperm.slane %v141_v6, 7  ;;  %p388_p11 = scmp.ne.s32.totalorder %s386_s26, %s387_s27  ;;  %p391_p13 = scmp.lt.s32.totalorder %s389_s29, %s387_s27 }
  0x29   : > { %v153_v17 = vperm.slane %v149_v9, 0  ;;  %v154_v18 = vperm.slane %v150_v10, 0  ;;  %v165_v19 = vperm.slane %v161_v11, 1  ;;  %v166_v20 = vperm.slane %v162_v12, 1 }
  0x2a   : > { %v179_v21 = vperm.slane %v175_v13, 2  ;;  %v180_v22 = vperm.slane %v176_v14, 2  ;;  %v193_v23 = vperm.slane %v189_v15, 3  ;;  %v194_v24 = vperm.slane %v190_v16, 3  ;;  %p392_p0 = por %p391_p13, %p390_p12 }
  0x2c   : > { %p393_p1 = pnand %p392_p0, %p388_p11 }
  0x2e   : > { %329 = vset.pattern.permute.xlu0 %v433_v4 }
  0x2f   : > { %331 = vset.pattern.permute.xlu1 %v434_v5  ;;  %158 = vperm.xlu0 %329, %v142_v2  }
  0x30   : > { %186 = vperm.xlu1 %331, %v142_v2  }
  0x37   : > { %333 = vset.pattern.permute.xlu0 %v431_v0 }
  0x81   : > { %v203_v39 = vpop.permute.xlu2 %202 }
  0x98   : > { %v146_v7 = vpop.permute.xlu0 %145 }
  0x99   : > { %v173_v8 = vpop.permute.xlu1 %172  ;;  %v155_v27 = vmul.f32 %v153_v17, %v146_v7  ;;  %v156_v28 = vmul.f32 %v154_v18, %v146_v7 }
  0x9a   : > { %v181_v31 = vmul.f32 %v179_v21, %v173_v8  ;;  %v182_v32 = vmul.f32 %v180_v22, %v173_v8 }
  0xa1   : > { %v159_v25 = vpop.permute.xlu0 %158 }
  0xa2   : > { %v187_v26 = vpop.permute.xlu1 %186  ;;  %v167_v29 = vmul.f32 %v165_v19, %v159_v25  ;;  %v168_v30 = vmul.f32 %v166_v20, %v159_v25 }
  0xa3   : > { %v195_v35 = vmul.f32 %v193_v23, %v187_v26  ;;  %v196_v36 = vmul.f32 %v194_v24, %v187_v26 }
  0xa4   : > { %v169_v33 = vadd.f32 %v167_v29, %v155_v27  ;;  %v170_v34 = vadd.f32 %v168_v30, %v156_v28 }
  0xa6   : > { %v183_v37 = vadd.f32 %v181_v31, %v169_v33  ;;  %v184_v38 = vadd.f32 %v182_v32, %v170_v34 }
  0xa8   : > { %v197_v40 = vadd.f32 %v195_v35, %v183_v37  ;;  %v198_v41 = vadd.f32 %v196_v36, %v184_v38 }
  0xaa   : > { %v205_v42 = vadd.f32 %v203_v39, %v197_v40  ;;  %v206_v43 = vadd.f32 %v203_v39, %v198_v41 }
  0xac   : > { %v208_v44 = vmax.f32 %v206_v43, 0.0  ;;  %v207_v45 = vmax.f32 %v205_v42, 0.0 }
  0xae   : > { %v211_v46 = vrot.slane %v208_v44, 4 }
  0xb0   : > { %v213_v47 = vsel %vm212_vm0, %v207_v45, %v211_v46 }
  0xb1   : > { %215 = vst [vmem:[#allocation2] sm:$0xff] %v213_v47 }
  0xb2   : > { %396 = shalt.err (!%p393_p1)  }
  0xb3   : > { %230 = dma.vmem_to_hbm [thread:$0]  %s134_s30, 128, %s228_s24, [#allocation3] }
  0xb4   : > { %415 = dma.done.wait [#allocation3], 128 }
  0xb5   : > { %416 = vsyncadd [#allocation3], 4294967168 }
  0xb6 PF: > { %s15_s17 = sadd.s32 1, %s427_s17   ;;  %s535_s15 = smov %s423_s16 }
  0xb7   : > { %p12_p2 = scmp.ge.s32.totalorder %s15_s17, 3   ;;  %s536_s16 = smov %s538_s19 }
  0xb9   :  { %14 = sbr.rel (!%p12_p2) target bundleno = 2 (0x2), region = 62 }
  0xbe   :  { %233 = vsyncpa [#allocation5], 1 }
  0xbf   :  { %235 = vsyncpa [#allocation5 + $0x1], 1 }
  0xc0   :  { %236 = vsyncmov [#allocation3] }
  0xc3   :  { %s237_s30 = vpop.sfrf %236 }
  0xc4   :  { %p284_p3 = scmp.ne.s32.totalorder %s237_s30, 0 }
  0xc6   :  { %241 = shalt.err (%p284_p3)  }

</bundles_post_ra>
